<compile_context>
chip_gen: v6e
topology: v6e:2x2x1
jax: 0.10.0
libtpu: 0.0.40
codegen_flags: <defaults>
</compile_context>

<pallas_src>
import jax
import jax.numpy as jnp
from jax.experimental import pallas as pl
from jax.experimental.pallas import tpu as pltpu


def _round_up(x, m):
    return ((x + m - 1) // m) * m


def mlp_kernel(x_ref, w1_ref, b1_ref, w2_ref, b2_ref, w3_ref, b3_ref, o_ref):
    """Full forward pass for one lane-dense batch tile.

    x_ref : (IN,  TB)  activations, batch on lanes
    wN_ref: (out, in)  PyTorch-orientation weights (VMEM-resident across grid)
    bN_ref: (out, 1)   column bias, broadcasts across lanes
    o_ref : (OUT, TB)
    """
    x = x_ref[...]
    h1 = jnp.dot(w1_ref[...], x, preferred_element_type=jnp.float32) + b1_ref[...]
    h1 = jnp.maximum(h1, 0.0)
    h2 = jnp.dot(w2_ref[...], h1, preferred_element_type=jnp.float32) + b2_ref[...]
    h2 = jnp.maximum(h2, 0.0)
    y = jnp.dot(w3_ref[...], h2, preferred_element_type=jnp.float32) + b3_ref[...]
    o_ref[...] = y.astype(o_ref.dtype)


def ann_model_forward(x, params, *, batch_tile=2048):
    """x: (B, input_features) float32.  params: dict of (out,in) weights / (out,1) biases.

    Note: for genuinely tiny per-call batches the launch/DMA setup dominates;
    callers should batch many requests into one call (the grid below then
    streams them at HBM roofline).
    """
    w1, b1 = params["w1"], params["b1"]
    w2, b2 = params["w2"], params["b2"]
    w3, b3 = params["w3"], params["b3"]

    B, in_features = x.shape
    h1_f, h2_f, out_features = w1.shape[0], w2.shape[0], w3.shape[0]

    # Lane (last) dim of every streamed block must be a multiple of 128.
    tb = min(batch_tile, _round_up(B, 128))
    b_pad = _round_up(B, tb)
    grid = (b_pad // tb,)

    # Feature-major, lane-dense activation slab.  (Wrapper-side layout plumbing.)
    x_t = x.T  # (IN, B)
    if b_pad != B:
        x_t = jnp.pad(x_t, ((0, 0), (0, b_pad - B)))

    # Advisory cost hint so XLA schedules surrounding ops sensibly.
    flops = 2 * b_pad * (in_features * h1_f + h1_f * h2_f + h2_f * out_features)
    bytes_accessed = 4 * (
        b_pad * (in_features + out_features)
        + in_features * h1_f + h1_f
        + h1_f * h2_f + h2_f
        + h2_f * out_features + out_features
    )
    cost = pl.CostEstimate(flops=flops, transcendentals=0,
                           bytes_accessed=bytes_accessed)

    resident = lambda shape: pl.BlockSpec(shape, lambda i: (0, 0))

    out_t = pl.pallas_call(
        mlp_kernel,
        out_shape=jax.ShapeDtypeStruct((out_features, b_pad), jnp.float32),
        grid_spec=pltpu.PrefetchScalarGridSpec(
            num_scalar_prefetch=0,
            grid=grid,
            in_specs=[
                pl.BlockSpec((in_features, tb), lambda i: (0, i)),  # streamed x tile
                resident(w1.shape), resident(b1.shape),
                resident(w2.shape), resident(b2.shape),
                resident(w3.shape), resident(b3.shape),
            ],
            out_specs=pl.BlockSpec((out_features, tb), lambda i: (0, i)),
        ),
        compiler_params=pltpu.CompilerParams(
            dimension_semantics=("parallel",),
        ),
        cost_estimate=cost,
    )(x_t, w1, b1, w2, b2, w3, b3)

    return out_t[:, :B].T  # back to (B, out_features)


def init_params(key, input_features=8, hidden1=20, hidden2=20, out_features=2):
    """Deterministic init mimicking nn.Linear default: U(-1/sqrt(fan_in), +1/sqrt(fan_in)).
    Weights stored in PyTorch orientation (out, in); biases as (out, 1) columns."""
    ks = jax.random.split(key, 6)

    def lin(kw, kb, fan_in, fan_out):
        bound = 1.0 / jnp.sqrt(fan_in)
        w = jax.random.uniform(kw, (fan_out, fan_in), jnp.float32, -bound, bound)
        b = jax.random.uniform(kb, (fan_out, 1), jnp.float32, -bound, bound)
        return w, b

    w1, b1 = lin(ks[0], ks[1], input_features, hidden1)
    w2, b2 = lin(ks[2], ks[3], hidden1, hidden2)
    w3, b3 = lin(ks[4], ks[5], hidden2, out_features)
    return {"w1": w1, "b1": b1, "w2": w2, "b2": b2, "w3": w3, "b3": b3}


if __name__ == "__main__":
    key = jax.random.PRNGKey(0)
    k_params, k_x = jax.random.split(key)

    input_features, hidden1, hidden2, out_features = 8, 20, 20, 2
    batch = 8

    params = init_params(k_params, input_features, hidden1, hidden2, out_features)
    x = jax.random.normal(k_x, (batch, input_features), jnp.float32)

    out = ann_model_forward(x, params)
    out = jax.block_until_ready(out)

    # Pure-JAX reference of the same forward pass (standard batch-major form).
    def ref(x, p):
        h1 = jnp.maximum(x @ p["w1"].T + p["b1"].T, 0.0)
        h2 = jnp.maximum(h1 @ p["w2"].T + p["b2"].T, 0.0)
        return h2 @ p["w3"].T + p["b3"].T

    expected = ref(x, params)
    assert out.shape == (batch, out_features)
    assert jnp.allclose(out, expected, atol=1e-5, rtol=1e-5)

    print("KERNEL_OK")
</pallas_src>

<mosaic_0001>
module attributes {stable_mosaic.version = 11 : i64} {
  func.func @mlp_kernel(%arg0: i32, %arg1: memref<8x128xf32, #tpu.memory_space<vmem>>, %arg2: memref<20x8xf32, #tpu.memory_space<vmem>>, %arg3: memref<20x1xf32, #tpu.memory_space<vmem>>, %arg4: memref<20x20xf32, #tpu.memory_space<vmem>>, %arg5: memref<20x1xf32, #tpu.memory_space<vmem>>, %arg6: memref<2x20xf32, #tpu.memory_space<vmem>>, %arg7: memref<2x1xf32, #tpu.memory_space<vmem>>, %arg8: memref<2x128xf32, #tpu.memory_space<vmem>>) attributes {dimension_semantics = [#tpu.dimension_semantics<parallel>], iteration_bounds = array<i64: 1>, scalar_prefetch = 0 : i64, scratch_operands = 0 : i64, tpu.core_type = #tpu.core_type<tc>, window_params = [{transform_indices = @transform_0, window_bounds = array<i64: 8, 128>}, {pipeline_mode = #tpu.pipeline_mode<synchronous>, transform_indices = @transform_1, window_bounds = array<i64: 20, 8>}, {pipeline_mode = #tpu.pipeline_mode<synchronous>, transform_indices = @transform_2, window_bounds = array<i64: 20, 1>}, {pipeline_mode = #tpu.pipeline_mode<synchronous>, transform_indices = @transform_3, window_bounds = array<i64: 20, 20>}, {pipeline_mode = #tpu.pipeline_mode<synchronous>, transform_indices = @transform_4, window_bounds = array<i64: 20, 1>}, {pipeline_mode = #tpu.pipeline_mode<synchronous>, transform_indices = @transform_5, window_bounds = array<i64: 2, 20>}, {pipeline_mode = #tpu.pipeline_mode<synchronous>, transform_indices = @transform_6, window_bounds = array<i64: 2, 1>}, {transform_indices = @transform_7, window_bounds = array<i64: 2, 128>}]} {
    %c0 = arith.constant 0 : index
    %c0_0 = arith.constant 0 : index
    %0 = vector.load %arg1[%c0, %c0_0] : memref<8x128xf32, #tpu.memory_space<vmem>>, vector<8x128xf32>
    %c0_1 = arith.constant 0 : index
    %c0_2 = arith.constant 0 : index
    %1 = vector.load %arg2[%c0_1, %c0_2] : memref<20x8xf32, #tpu.memory_space<vmem>>, vector<20x8xf32>
    %cst = arith.constant dense<0.000000e+00> : vector<20x128xf32>
    %2 = tpu.matmul %1, %0, %cst {dimension_numbers = #tpu.dot_dimension_numbers<[1], [0], [0], [1], [0, 0, 1, 1], [], []>} : vector<20x8xf32>, vector<8x128xf32>, vector<20x128xf32> -> vector<20x128xf32>
    %c0_3 = arith.constant 0 : index
    %c0_4 = arith.constant 0 : index
    %3 = vector.load %arg3[%c0_3, %c0_4] : memref<20x1xf32, #tpu.memory_space<vmem>>, vector<20x1xf32>
    %4 = vector.broadcast %3 : vector<20x1xf32> to vector<20x128xf32>
    %5 = arith.addf %2, %4 : vector<20x128xf32>
    %cst_5 = arith.constant 0.000000e+00 : f32
    %6 = vector.broadcast %cst_5 : f32 to vector<20x128xf32>
    %7 = arith.maximumf %5, %6 : vector<20x128xf32>
    %c0_6 = arith.constant 0 : index
    %c0_7 = arith.constant 0 : index
    %8 = vector.load %arg4[%c0_6, %c0_7] : memref<20x20xf32, #tpu.memory_space<vmem>>, vector<20x20xf32>
    %cst_8 = arith.constant dense<0.000000e+00> : vector<20x128xf32>
    %9 = tpu.matmul %8, %7, %cst_8 {dimension_numbers = #tpu.dot_dimension_numbers<[1], [0], [0], [1], [0, 0, 1, 1], [], []>} : vector<20x20xf32>, vector<20x128xf32>, vector<20x128xf32> -> vector<20x128xf32>
    %c0_9 = arith.constant 0 : index
    %c0_10 = arith.constant 0 : index
    %10 = vector.load %arg5[%c0_9, %c0_10] : memref<20x1xf32, #tpu.memory_space<vmem>>, vector<20x1xf32>
    %11 = vector.broadcast %10 : vector<20x1xf32> to vector<20x128xf32>
    %12 = arith.addf %9, %11 : vector<20x128xf32>
    %cst_11 = arith.constant 0.000000e+00 : f32
    %13 = vector.broadcast %cst_11 : f32 to vector<20x128xf32>
    %14 = arith.maximumf %12, %13 : vector<20x128xf32>
    %c0_12 = arith.constant 0 : index
    %c0_13 = arith.constant 0 : index
    %15 = vector.load %arg6[%c0_12, %c0_13] : memref<2x20xf32, #tpu.memory_space<vmem>>, vector<2x20xf32>
    %cst_14 = arith.constant dense<0.000000e+00> : vector<2x128xf32>
    %16 = tpu.matmul %15, %14, %cst_14 {dimension_numbers = #tpu.dot_dimension_numbers<[1], [0], [0], [1], [0, 0, 1, 1], [], []>} : vector<2x20xf32>, vector<20x128xf32>, vector<2x128xf32> -> vector<2x128xf32>
    %c0_15 = arith.constant 0 : index
    %c0_16 = arith.constant 0 : index
    %17 = vector.load %arg7[%c0_15, %c0_16] : memref<2x1xf32, #tpu.memory_space<vmem>>, vector<2x1xf32>
    %18 = vector.broadcast %17 : vector<2x1xf32> to vector<2x128xf32>
    %19 = arith.addf %16, %18 : vector<2x128xf32>
    %c0_17 = arith.constant 0 : index
    %c0_18 = arith.constant 0 : index
    %20 = vector.load %arg8[%c0_17, %c0_18] : memref<2x128xf32, #tpu.memory_space<vmem>>, vector<2x128xf32>
    tpu.vector_store %arg8[%c0_17, %c0_18], %19 {strides = array<i32>} : memref<2x128xf32, #tpu.memory_space<vmem>>, vector<2x128xf32>,
    return
  }
  func.func @transform_0(%arg0: i32) -> (i32, i32) {
    %c0_i32 = arith.constant 0 : i32
    %c0_i32_0 = arith.constant 0 : i32
    return %c0_i32, %arg0 : i32, i32
  }
  func.func @transform_1(%arg0: i32) -> (i32, i32) {
    %c0_i32 = arith.constant 0 : i32
    %c0_i32_0 = arith.constant 0 : i32
    %c0_i32_1 = arith.constant 0 : i32
    return %c0_i32, %c0_i32_0 : i32, i32
  }
  func.func @transform_2(%arg0: i32) -> (i32, i32) {
    %c0_i32 = arith.constant 0 : i32
    %c0_i32_0 = arith.constant 0 : i32
    %c0_i32_1 = arith.constant 0 : i32
    return %c0_i32, %c0_i32_0 : i32, i32
  }
  func.func @transform_3(%arg0: i32) -> (i32, i32) {
    %c0_i32 = arith.constant 0 : i32
    %c0_i32_0 = arith.constant 0 : i32
    %c0_i32_1 = arith.constant 0 : i32
    return %c0_i32, %c0_i32_0 : i32, i32
  }
  func.func @transform_4(%arg0: i32) -> (i32, i32) {
    %c0_i32 = arith.constant 0 : i32
    %c0_i32_0 = arith.constant 0 : i32
    %c0_i32_1 = arith.constant 0 : i32
    return %c0_i32, %c0_i32_0 : i32, i32
  }
  func.func @transform_5(%arg0: i32) -> (i32, i32) {
    %c0_i32 = arith.constant 0 : i32
    %c0_i32_0 = arith.constant 0 : i32
    %c0_i32_1 = arith.constant 0 : i32
    return %c0_i32, %c0_i32_0 : i32, i32
  }
  func.func @transform_6(%arg0: i32) -> (i32, i32) {
    %c0_i32 = arith.constant 0 : i32
    %c0_i32_0 = arith.constant 0 : i32
    %c0_i32_1 = arith.constant 0 : i32
    return %c0_i32, %c0_i32_0 : i32, i32
  }
  func.func @transform_7(%arg0: i32) -> (i32, i32) {
    %c0_i32 = arith.constant 0 : i32
    %c0_i32_0 = arith.constant 0 : i32
    return %c0_i32, %arg0 : i32, i32
  }
}

</mosaic_0001>

<bundles_post_ra>
// kernel: tpu_custom_call.1
= control target key start
LH: loop header
LB: loop body
LE: loop exit
PB: predicated region body
PF: predicated region fallthrough
CT: control target
= control target key end

     0   :  { %vm49_vm0 = vcmask 64512   ;;  %v444_v2 = vmov 0.0   ;;  %vm445_vm1 = vmmov 0   ;;  %v446_v4 = vmov 0   ;;  %s566_s0 = inlined_call_operand.vmem [shape: f32[8,128], index: 0, kind: input, shape index: {}]   ;;  %s567_s1 = inlined_call_operand.vmem [shape: f32[20,8], index: 1, kind: input, shape index: {}]   ;;  %s568_s2 = inlined_call_operand.vmem [shape: f32[20,1], index: 2, kind: input, shape index: {}]   ;;  %s569_s3 = inlined_call_operand.vmem [shape: f32[20,20], index: 3, kind: input, shape index: {}]   ;;  %s570_s4 = inlined_call_operand.vmem [shape: f32[20,1], index: 4, kind: input, shape index: {}]   ;;  %s571_s5 = inlined_call_operand.vmem [shape: f32[2,20], index: 5, kind: input, shape index: {}]   ;;  %s572_s6 = inlined_call_operand.vmem [shape: f32[2,1], index: 6, kind: input, shape index: {}]   ;;  %s573_s7 = inlined_call_operand.hbm [shape: f32[2,128], index: 7, kind: output, shape index: {}]  }
   0x1   :  { %v27_v0 = vld [vmem:[%s566_s0] sm:$0xff]  ;;  %381 = vmatprep.subr.mxu0 %v444_v2  ;;  %383 = vmatprep.mubr.msk.f32.mxu0 %vm445_vm1, %v444_v2  ;;  %v33_v3 = vld [vmem:[%s568_s2 + $0x10] sm:$0xf] }
   0x2   :  { %v28_v1 = vld [vmem:[%s567_s1] sm:$0xff]  ;;  %382 = vmatpush3.msra.mxu0 %v27_v0  ;;  %420 = vset.pattern.permute.xlu0 %v446_v4 }
   0x3   :  { %v31_v5 = vld [vmem:[%s568_s2] sm:$0xff]  ;;  %384 = vmatmul.mubr.msk.f32.vlgmr.msra.gmra.mxu0 %vm49_vm0, %v28_v1  ;;  %46 = vperm.xlu0 %420, %v33_v3  }
   0x4   :  { %12 = vsyncpa [#allocation3], 0  ;;  %386 = vmatprep.mubr.msk.f32.mxu0 %vm445_vm1, %v444_v2  ;;  %v29_v6 = vld [vmem:[%s567_s1 + $0x8] sm:$0xff]  ;;  %421 = vset.pattern.permute.xlu1 %v446_v4  ;;  %v147_v8 = vld [vmem:[%s570_s4 + $0x10] sm:$0xf]  ;;  %vm173_vm2 = vcmask 1043456  }
   0x5   :  { %v32_v7 = vld [vmem:[%s568_s2 + $0x8] sm:$0xff]  ;;  %36 = vperm.xlu1 %421, %v31_v5   ;;  %392 = vmatprep.subr.mxu1 %v444_v2  ;;  %v30_v9 = vld [vmem:[%s567_s1 + $0x10] sm:$0xf]  ;;  %v145_v11 = vld [vmem:[%s570_s4] sm:$0xff]  ;;  %vm163_vm3 = vcmask 162816   ;;  %s447_s25 = smov [#allocation2]  }
   0x6   :  { %398 = vmatprep.mubr.msk.f32.mxu1 %vm445_vm1, %v444_v2  ;;  %407 = vmatprep.subr.mxu0 %v444_v2  ;;  %v146_v10 = vld [vmem:[%s570_s4 + $0x8] sm:$0xff]  ;;  %v261_v12 = vld [vmem:[%s572_s6] sm:$0x3]  ;;  %v144_v30 = vld [vmem:[%s569_s3 + $0x10] sm:$0xf]  ;;  %s350_s26 = sshll.u32 %s447_s25, 4  ;;  %s351_s26 = int_to_ptr.vmem [resolvable:$true] %s350_s26 }
   0x7   :  { %387 = vmatmul.mubr.msk.f32.gmra.mxu0 %vm49_vm0, %v29_v6  ;;  %41 = vperm.xlu0 %420, %v32_v7   ;;  %v142_v28 = vld [vmem:[%s569_s3] sm:$0xff]  ;;  %v143_v29 = vld [vmem:[%s569_s3 + $0x8] sm:$0xff]  ;;  %s422_s27 = scalar_lea.vmem %s351_s26, 32  ;;  %p427_p1 = scmp.lt.s32.totalorder %s351_s26, %s351_s26 }
   0x8   :  { %389 = vmatprep.mubr.msk.f32.mxu0 %vm445_vm1, %v444_v2  ;;  %v260_v46 = vld [vmem:[%s571_s5] sm:$0x3]  ;;  %p423_p0 = scmp.ne.s32.totalorder %s351_s26, %s422_s27  ;;  %p428_p2 = scmp.lt.s32.totalorder %s422_s27, %s422_s27 }
   0x9   :  { %160 = vperm.xlu1 %421, %v147_v8  }
   0xa   :  { %p429_p3 = por %p428_p2, %p427_p1 }
   0xb   :  { %390 = vmatmul.mubr.msk.f32.gmra.mxu0 %vm49_vm0, %v30_v9  ;;  %155 = vperm.xlu0 %420, %v146_v10  }
   0xc   :  { %413 = vmatprep.mubr.msk.f32.mxu0 %vm445_vm1, %v444_v2  ;;  %p430_p4 = pnand %p429_p3, %p423_p0 }
   0xd   :  { %150 = vperm.xlu1 %421, %v145_v11  }
   0xf   :  { %264 = vperm.xlu0 %420, %v261_v12  }
  0x7e   :  { %v47_v14 = vpop.permute.xlu0 %46 }
  0x80   :  { %v37_v18 = vpop.permute.xlu1 %36 }
  0x82   :  { %v42_v19 = vpop.permute.xlu0 %41 }
  0x84   :  { %v161_v33 = vpop.permute.xlu1 %160 }
  0x86   :  { %v156_v36 = vpop.permute.xlu0 %155 }
  0x88   :  { %v151_v40 = vpop.permute.xlu1 %150 }
  0x8a   :  { %v265_v47 = vpop.permute.xlu0 %264 }
  0xc3   :  { %v125_v13 = vpop.f32.mrf.mxu0 }
  0xc4   :  { %v126_v24 = vadd.f32 %v125_v13, %v37_v18 }
  0xc5   :  { %v385_v15 = vpop.f32.mrf.mxu0 }
  0xc6   :  { %v139_v27 = vmax.f32 %v126_v24, 0.0 }
  0xc7   :  { %v130_v16 = vpop.f32.mrf.mxu0 }
  0xc8   :  { %v131_v21 = vadd.f32 %v130_v16, %v42_v19 }
  0xc9   :  { %v388_v17 = vpop.f32.mrf.mxu0 }
  0xca   :  { %v140_v26 = vmax.f32 %v131_v21, 0.0 }
  0xcb   :  { %v135_v20 = vpop.f32.mrf.mxu0 }
  0xcc   :  { %v136_v22 = vadd.f32 %v135_v20, %v47_v14 }
  0xcd   :  { %v391_v23 = vpop.f32.mrf.mxu0 }
  0xce   :  { %v141_v25 = vmax.f32 %v136_v22, 0.0 }
  0xd0   :  { %393 = vmatpush3.msk.msra.mxu1 %vm173_vm2, %v141_v25 }
  0xd1   :  { %394 = vmatprep.subr.mxu1 %v444_v2 }
  0xd2   :  { %395 = vmatpush3.msra.mxu1 %v140_v26 }
  0xd3   :  { %396 = vmatprep.subr.mxu1 %v444_v2 }
  0xd4   :  { %397 = vmatpush3.msra.mxu1 %v139_v27 }
  0xd5   :  { %399 = vmatmul.mubr.msk.f32.vlgmr.msra.gmra.mxu1 %vm163_vm3, %v142_v28 }
  0xd6   :  { %401 = vmatprep.mubr.msk.f32.mxu1 %vm445_vm1, %v444_v2 }
  0xd9   :  { %402 = vmatmul.mubr.msk.f32.gmra.mxu1 %vm163_vm3, %v143_v29 }
  0xda   :  { %404 = vmatprep.mubr.msk.f32.mxu1 %vm445_vm1, %v444_v2 }
  0xdd   :  { %405 = vmatmul.mubr.msk.f32.gmra.mxu1 %vm163_vm3, %v144_v30 }
 0x195   :  { %v243_v31 = vpop.f32.mrf.mxu1 }
 0x196   :  { %v244_v42 = vadd.f32 %v243_v31, %v151_v40 }
 0x197   :  { %v400_v32 = vpop.f32.mrf.mxu1 }
 0x198   :  { %v257_v45 = vmax.f32 %v244_v42, 0.0 }
 0x199   :  { %v248_v34 = vpop.f32.mrf.mxu1 }
 0x19a   :  { %v249_v38 = vadd.f32 %v248_v34, %v156_v36 }
 0x19b   :  { %v403_v35 = vpop.f32.mrf.mxu1 }
 0x19c   :  { %v258_v44 = vmax.f32 %v249_v38, 0.0 }
 0x19d   :  { %v253_v37 = vpop.f32.mrf.mxu1 }
 0x19e   :  { %v254_v39 = vadd.f32 %v253_v37, %v161_v33 }
 0x19f   :  { %v406_v41 = vpop.f32.mrf.mxu1 }
 0x1a0   :  { %v259_v43 = vmax.f32 %v254_v39, 0.0 }
 0x1a2   :  { %408 = vmatpush3.msk.msra.mxu0 %vm173_vm2, %v259_v43 }
 0x1a3   :  { %409 = vmatprep.subr.mxu0 %v444_v2 }
 0x1a4   :  { %410 = vmatpush3.msra.mxu0 %v258_v44 }
 0x1a5   :  { %411 = vmatprep.subr.mxu0 %v444_v2 }
 0x1a6   :  { %412 = vmatpush3.msra.mxu0 %v257_v45 }
 0x1a7   :  { %414 = vmatmul.mubr.msk.f32.vlgmr.msra.gmra.mxu0 %vm163_vm3, %v260_v46 }
 0x267   :  { %v339_v48 = vpop.f32.mrf.mxu0 }
 0x268   :  { %v340_v49 = vadd.f32 %v339_v48, %v265_v47 }
 0x269   :  { %v415_v50 = vpop.f32.mrf.mxu0 }
 0x26a   :  { %343 = vst [vmem:[#allocation2] sm:$0x3] %v340_v49 }
 0x26b   :  { %433 = shalt.err (!%p430_p4)
}
 0x26c   :  { %353 = dma.vmem_to_hbm [thread:$0]  %s351_s26, 32, %s573_s7, [#allocation3]  }
 0x26d   :  { %442 = dma.done.wait [#allocation3], 32  }
 0x26e   :  { %443 = vsyncadd [#allocation3], 4294967264 }
 0x26f   :  { %357 = vsyncpa [#allocation3], 1 }

</bundles_post_ra>
